<compile_context>
chip_gen: v7x
topology: tpu7x:2x2x1
jax: 0.10.0
libtpu: 0.0.40
codegen_flags: <defaults>
</compile_context>

<pallas_src>
import functools
import math

import jax
import jax.numpy as jnp
from jax.experimental import pallas as pl
from jax.experimental.pallas import tpu as pltpu


def _round_up(x, m):
    return ((x + m - 1) // m) * m


# ---------------------------------------------------------------------------
# Pallas kernel: one row-tile of   out = act(patches @ weight + bias)
# ---------------------------------------------------------------------------
def _matmul_bias_act_kernel(p_ref, w_ref, b_ref, o_ref, *, relu):
    acc = jnp.dot(p_ref[...], w_ref[...], preferred_element_type=jnp.float32)
    acc = acc + b_ref[...]                        # bias broadcast over rows
    if relu:
        acc = jnp.maximum(acc, 0.0)
    o_ref[...] = acc.astype(o_ref.dtype)


def _conv_matmul(patches, w2d, bias, *, relu, row_tile=512):
    """out = act(patches @ w2d + bias).

    patches: (P, K) f32, w2d: (K, C) f32, bias: (C,) f32 -> (P, C) f32.
    Output channels are zero-padded to a multiple of 128 (lane-dense stores);
    rows are padded to a multiple-of-8 tile and tiled over a parallel grid.
    """
    P, K = patches.shape
    C = w2d.shape[1]

    Cp = _round_up(C, 128)                        # lane-dense output
    tile_p = min(_round_up(P, 8), row_tile)
    Pp = _round_up(P, tile_p)

    p_pad = jnp.pad(patches, ((0, Pp - P), (0, 0)))
    w_pad = jnp.pad(w2d, ((0, 0), (0, Cp - C)))
    b_pad = jnp.pad(bias.reshape(1, C), ((0, 0), (0, Cp - C)))

    cost = pl.CostEstimate(
        flops=2 * Pp * K * Cp,
        transcendentals=0,
        bytes_accessed=4 * (Pp * K + K * Cp + Cp + Pp * Cp),
    )

    out = pl.pallas_call(
        functools.partial(_matmul_bias_act_kernel, relu=relu),
        out_shape=jax.ShapeDtypeStruct((Pp, Cp), jnp.float32),
        grid=(Pp // tile_p,),
        in_specs=[
            pl.BlockSpec((tile_p, K), lambda i: (i, 0)),
            pl.BlockSpec((K, Cp), lambda i: (0, 0)),
            pl.BlockSpec((1, Cp), lambda i: (0, 0)),
        ],
        out_specs=pl.BlockSpec((tile_p, Cp), lambda i: (i, 0)),
        compiler_params=pltpu.CompilerParams(
            dimension_semantics=("parallel",)),
        cost_estimate=cost,
    )(p_pad, w_pad, b_pad)
    return out[:P, :C]


# ---------------------------------------------------------------------------
# im2col glue (stride=1, dilation=1, VALID) + conv wrapper
# ---------------------------------------------------------------------------
def _im2col(x, k):
    """x: (N, C, H, W) -> (N*OH*OW, C*k*k); column order (c, ky, kx)."""
    N, C, H, W = x.shape
    OH, OW = H - k + 1, W - k + 1
    cols = jnp.stack(
        [x[:, :, ky:ky + OH, kx:kx + OW] for ky in range(k) for kx in range(k)],
        axis=2)                                       # (N, C, k*k, OH, OW)
    patches = jnp.transpose(cols, (0, 3, 4, 1, 2))    # (N, OH, OW, C, k*k)
    return patches.reshape(N * OH * OW, C * k * k), OH, OW


def _conv2d(x, w, b, *, relu):
    """PyTorch-style Conv2d (stride=1, dilation=1, no padding) [+ ReLU]."""
    N = x.shape[0]
    O, C, k, _ = w.shape
    patches, OH, OW = _im2col(x, k)
    w2d = w.reshape(O, C * k * k).T
    out = _conv_matmul(patches, w2d, b, relu=relu)    # (N*OH*OW, O)
    return jnp.transpose(out.reshape(N, OH, OW, O), (0, 3, 1, 2))


# ---------------------------------------------------------------------------
# Separator structure bookkeeping (mirrors Separator.__init__)
# ---------------------------------------------------------------------------
def separator_structure(qbits_num, out_ch_per_rho, filters_ratio, kernel_size,
                        output_dim=2, dilation=1, ratio_type=None, padding=0,
                        stride=1, input_channels=2):
    dim = 2 ** qbits_num
    in_ch = input_channels
    fr = filters_ratio
    out_dim = dim
    stack = []                                        # (in_ch, out_ch) per conv
    while math.floor((out_dim - dilation * (kernel_size - 1) - 1) / stride + 1) > output_dim:
        out_ch = int(in_ch * fr)
        stack.append((in_ch, out_ch))
        in_ch = out_ch
        if ratio_type == 'sqrt':
            fr = math.sqrt(fr)
        elif ratio_type == 'sq':
            fr = fr ** 2
        out_dim = math.floor(
            (out_dim + 2 * padding - dilation * (kernel_size - 1) - 1) / stride + 1)
    # Kernel size of the output convs so the final spatial dim == output_dim.
    # (The PyTorch source derives this from `self.conv_out_dim`; we solve the
    #  same output-size equation directly.)
    ks = (out_dim + 2 * padding - 1 - stride * (output_dim - 1)) // dilation + 1
    final = math.floor((out_dim + 2 * padding - dilation * (ks - 1) - 1) / stride + 1)
    assert final == output_dim, 'Wrong output dimension'
    out_per_head = input_channels * out_ch_per_rho
    feat_ch = stack[-1][1] if stack else input_channels
    return stack, out_dim, ks, feat_ch, out_per_head


# ---------------------------------------------------------------------------
# Forward (mirrors Separator.forward)
# ---------------------------------------------------------------------------
def separator_forward(x, params, stack, out_per_head):
    h = x
    for li in range(len(stack)):
        h = _conv2d(h, params["conv_w"][li], params["conv_b"][li], relu=True)
    # Fuse all qbits_num output convs (same input, same kernel) into one
    # Pallas matmul by concatenating their weights along output channels.
    n_heads = len(params["out_w"])
    w_all = jnp.concatenate(params["out_w"], axis=0)
    b_all = jnp.concatenate(params["out_b"], axis=0)
    fused = _conv2d(h, w_all, b_all, relu=False)      # (N, n_heads*out_per, 2, 2)
    return [fused[:, i * out_per_head:(i + 1) * out_per_head]
            for i in range(n_heads)]


# ---------------------------------------------------------------------------
# Parameter init (PyTorch Conv2d default: U(-1/sqrt(fan_in), +1/sqrt(fan_in)))
# ---------------------------------------------------------------------------
def init_params(key, stack, kernel_size, ks, feat_ch, out_per_head, qbits_num):
    keys = jax.random.split(key, 2 * len(stack) + 2 * qbits_num)
    ki = 0
    conv_w, conv_b = [], []
    for (ci, co) in stack:
        bnd = 1.0 / math.sqrt(ci * kernel_size * kernel_size)
        conv_w.append(jax.random.uniform(
            keys[ki], (co, ci, kernel_size, kernel_size), jnp.float32, -bnd, bnd)); ki += 1
        conv_b.append(jax.random.uniform(
            keys[ki], (co,), jnp.float32, -bnd, bnd)); ki += 1
    out_w, out_b = [], []
    bnd = 1.0 / math.sqrt(feat_ch * ks * ks)
    for _ in range(qbits_num):
        out_w.append(jax.random.uniform(
            keys[ki], (out_per_head, feat_ch, ks, ks), jnp.float32, -bnd, bnd)); ki += 1
        out_b.append(jax.random.uniform(
            keys[ki], (out_per_head,), jnp.float32, -bnd, bnd)); ki += 1
    return {"conv_w": conv_w, "conv_b": conv_b, "out_w": out_w, "out_b": out_b}


if __name__ == "__main__":
    qbits_num = 3            # dim = 8
    ocpr = 2                 # out_ch_per_rho
    filters_ratio = 2
    kernel_size = 3
    N = 2
    dim = 2 ** qbits_num

    stack, feat_dim, ks, feat_ch, out_per_head = separator_structure(
        qbits_num, ocpr, filters_ratio, kernel_size)

    key = jax.random.PRNGKey(0)
    kx, kp = jax.random.split(key)
    x = jax.random.normal(kx, (N, 2, dim, dim), jnp.float32)
    params = init_params(kp, stack, kernel_size, ks, feat_ch, out_per_head, qbits_num)

    fwd = jax.jit(lambda xx: separator_forward(xx, params, stack, out_per_head))
    outs = fwd(x)
    outs = [jax.block_until_ready(o) for o in outs]

    assert len(outs) == qbits_num
    for o in outs:
        assert o.shape == (N, out_per_head, 2, 2), o.shape

    # Reference check against XLA's native convolutions.
    dn = ("NCHW", "OIHW", "NCHW")
    h = x
    for li in range(len(stack)):
        h = jax.lax.conv_general_dilated(h, params["conv_w"][li], (1, 1), "VALID",
                                         dimension_numbers=dn)
        h = jax.nn.relu(h + params["conv_b"][li].reshape(1, -1, 1, 1))
    for i in range(qbits_num):
        ref = jax.lax.conv_general_dilated(h, params["out_w"][i], (1, 1), "VALID",
                                           dimension_numbers=dn)
        ref = ref + params["out_b"][i].reshape(1, -1, 1, 1)
        err = float(jnp.max(jnp.abs(outs[i] - ref)))
        assert jnp.allclose(outs[i], ref, atol=1e-4, rtol=1e-4), (i, err)

    print("KERNEL_OK")
</pallas_src>

<mosaic_0001>
module attributes {stable_mosaic.version = 11 : i64} {
  func.func @_matmul_bias_act_kernel(%arg0: i32, %arg1: memref<72x18xf32, #tpu.memory_space<vmem>>, %arg2: memref<18x128xf32, #tpu.memory_space<vmem>>, %arg3: memref<1x128xf32, #tpu.memory_space<vmem>>, %arg4: memref<72x128xf32, #tpu.memory_space<vmem>>) attributes {dimension_semantics = [#tpu.dimension_semantics<parallel>], iteration_bounds = array<i64: 1>, scalar_prefetch = 0 : i64, scratch_operands = 0 : i64, tpu.core_type = #tpu.core_type<tc>, window_params = [{transform_indices = @transform_0, window_bounds = array<i64: 72, 18>}, {pipeline_mode = #tpu.pipeline_mode<synchronous>, transform_indices = @transform_1, window_bounds = array<i64: 18, 128>}, {pipeline_mode = #tpu.pipeline_mode<synchronous>, transform_indices = @transform_2, window_bounds = array<i64: 1, 128>}, {transform_indices = @transform_3, window_bounds = array<i64: 72, 128>}]} {
    %c0 = arith.constant 0 : index
    %c0_0 = arith.constant 0 : index
    %0 = vector.load %arg1[%c0, %c0_0] : memref<72x18xf32, #tpu.memory_space<vmem>>, vector<72x18xf32>
    %c0_1 = arith.constant 0 : index
    %c0_2 = arith.constant 0 : index
    %1 = vector.load %arg2[%c0_1, %c0_2] : memref<18x128xf32, #tpu.memory_space<vmem>>, vector<18x128xf32>
    %cst = arith.constant dense<0.000000e+00> : vector<72x128xf32>
    %2 = tpu.matmul %0, %1, %cst {dimension_numbers = #tpu.dot_dimension_numbers<[1], [0], [0], [1], [0, 0, 1, 1], [], []>} : vector<72x18xf32>, vector<18x128xf32>, vector<72x128xf32> -> vector<72x128xf32>
    %c0_3 = arith.constant 0 : index
    %c0_4 = arith.constant 0 : index
    %3 = vector.load %arg3[%c0_3, %c0_4] : memref<1x128xf32, #tpu.memory_space<vmem>>, vector<1x128xf32>
    %4 = vector.broadcast %3 : vector<1x128xf32> to vector<72x128xf32>
    %5 = arith.addf %2, %4 : vector<72x128xf32>
    %cst_5 = arith.constant 0.000000e+00 : f32
    %6 = vector.broadcast %cst_5 : f32 to vector<72x128xf32>
    %7 = arith.maximumf %5, %6 : vector<72x128xf32>
    %c0_6 = arith.constant 0 : index
    %c0_7 = arith.constant 0 : index
    %8 = vector.load %arg4[%c0_6, %c0_7] : memref<72x128xf32, #tpu.memory_space<vmem>>, vector<72x128xf32>
    tpu.vector_store %arg4[%c0_6, %c0_7], %7 {strides = array<i32>} : memref<72x128xf32, #tpu.memory_space<vmem>>, vector<72x128xf32>,
    return
  }
  func.func @transform_0(%arg0: i32) -> (i32, i32) {
    %c0_i32 = arith.constant 0 : i32
    %c0_i32_0 = arith.constant 0 : i32
    return %arg0, %c0_i32 : i32, i32
  }
  func.func @transform_1(%arg0: i32) -> (i32, i32) {
    %c0_i32 = arith.constant 0 : i32
    %c0_i32_0 = arith.constant 0 : i32
    %c0_i32_1 = arith.constant 0 : i32
    return %c0_i32, %c0_i32_0 : i32, i32
  }
  func.func @transform_2(%arg0: i32) -> (i32, i32) {
    %c0_i32 = arith.constant 0 : i32
    %c0_i32_0 = arith.constant 0 : i32
    %c0_i32_1 = arith.constant 0 : i32
    return %c0_i32, %c0_i32_0 : i32, i32
  }
  func.func @transform_3(%arg0: i32) -> (i32, i32) {
    %c0_i32 = arith.constant 0 : i32
    %c0_i32_0 = arith.constant 0 : i32
    return %arg0, %c0_i32 : i32, i32
  }
}

module attributes {stable_mosaic.version = 11 : i64} {
  func.func @_matmul_bias_act_kernel(%arg0: i32, %arg1: memref<32x36xf32, #tpu.memory_space<vmem>>, %arg2: memref<36x128xf32, #tpu.memory_space<vmem>>, %arg3: memref<1x128xf32, #tpu.memory_space<vmem>>, %arg4: memref<32x128xf32, #tpu.memory_space<vmem>>) attributes {dimension_semantics = [#tpu.dimension_semantics<parallel>], iteration_bounds = array<i64: 1>, scalar_prefetch = 0 : i64, scratch_operands = 0 : i64, tpu.core_type = #tpu.core_type<tc>, window_params = [{transform_indices = @transform_0, window_bounds = array<i64: 32, 36>}, {pipeline_mode = #tpu.pipeline_mode<synchronous>, transform_indices = @transform_1, window_bounds = array<i64: 36, 128>}, {pipeline_mode = #tpu.pipeline_mode<synchronous>, transform_indices = @transform_2, window_bounds = array<i64: 1, 128>}, {transform_indices = @transform_3, window_bounds = array<i64: 32, 128>}]} {
    %c0 = arith.constant 0 : index
    %c0_0 = arith.constant 0 : index
    %0 = vector.load %arg1[%c0, %c0_0] : memref<32x36xf32, #tpu.memory_space<vmem>>, vector<32x36xf32>
    %c0_1 = arith.constant 0 : index
    %c0_2 = arith.constant 0 : index
    %1 = vector.load %arg2[%c0_1, %c0_2] : memref<36x128xf32, #tpu.memory_space<vmem>>, vector<36x128xf32>
    %cst = arith.constant dense<0.000000e+00> : vector<32x128xf32>
    %2 = tpu.matmul %0, %1, %cst {dimension_numbers = #tpu.dot_dimension_numbers<[1], [0], [0], [1], [0, 0, 1, 1], [], []>} : vector<32x36xf32>, vector<36x128xf32>, vector<32x128xf32> -> vector<32x128xf32>
    %c0_3 = arith.constant 0 : index
    %c0_4 = arith.constant 0 : index
    %3 = vector.load %arg3[%c0_3, %c0_4] : memref<1x128xf32, #tpu.memory_space<vmem>>, vector<1x128xf32>
    %4 = vector.broadcast %3 : vector<1x128xf32> to vector<32x128xf32>
    %5 = arith.addf %2, %4 : vector<32x128xf32>
    %cst_5 = arith.constant 0.000000e+00 : f32
    %6 = vector.broadcast %cst_5 : f32 to vector<32x128xf32>
    %7 = arith.maximumf %5, %6 : vector<32x128xf32>
    %c0_6 = arith.constant 0 : index
    %c0_7 = arith.constant 0 : index
    %8 = vector.load %arg4[%c0_6, %c0_7] : memref<32x128xf32, #tpu.memory_space<vmem>>, vector<32x128xf32>
    tpu.vector_store %arg4[%c0_6, %c0_7], %7 {strides = array<i32>} : memref<32x128xf32, #tpu.memory_space<vmem>>, vector<32x128xf32>,
    return
  }
  func.func @transform_0(%arg0: i32) -> (i32, i32) {
    %c0_i32 = arith.constant 0 : i32
    %c0_i32_0 = arith.constant 0 : i32
    return %arg0, %c0_i32 : i32, i32
  }
  func.func @transform_1(%arg0: i32) -> (i32, i32) {
    %c0_i32 = arith.constant 0 : i32
    %c0_i32_0 = arith.constant 0 : i32
    %c0_i32_1 = arith.constant 0 : i32
    return %c0_i32, %c0_i32_0 : i32, i32
  }
  func.func @transform_2(%arg0: i32) -> (i32, i32) {
    %c0_i32 = arith.constant 0 : i32
    %c0_i32_0 = arith.constant 0 : i32
    %c0_i32_1 = arith.constant 0 : i32
    return %c0_i32, %c0_i32_0 : i32, i32
  }
  func.func @transform_3(%arg0: i32) -> (i32, i32) {
    %c0_i32 = arith.constant 0 : i32
    %c0_i32_0 = arith.constant 0 : i32
    return %arg0, %c0_i32 : i32, i32
  }
}

module attributes {stable_mosaic.version = 11 : i64} {
  func.func @_matmul_bias_act_kernel(%arg0: i32, %arg1: memref<8x72xf32, #tpu.memory_space<vmem>>, %arg2: memref<72x128xf32, #tpu.memory_space<vmem>>, %arg3: memref<1x128xf32, #tpu.memory_space<vmem>>, %arg4: memref<8x128xf32, #tpu.memory_space<vmem>>) attributes {dimension_semantics = [#tpu.dimension_semantics<parallel>], iteration_bounds = array<i64: 1>, scalar_prefetch = 0 : i64, scratch_operands = 0 : i64, tpu.core_type = #tpu.core_type<tc>, window_params = [{transform_indices = @transform_0, window_bounds = array<i64: 8, 72>}, {pipeline_mode = #tpu.pipeline_mode<synchronous>, transform_indices = @transform_1, window_bounds = array<i64: 72, 128>}, {pipeline_mode = #tpu.pipeline_mode<synchronous>, transform_indices = @transform_2, window_bounds = array<i64: 1, 128>}, {transform_indices = @transform_3, window_bounds = array<i64: 8, 128>}]} {
    %c0 = arith.constant 0 : index
    %c0_0 = arith.constant 0 : index
    %0 = vector.load %arg1[%c0, %c0_0] : memref<8x72xf32, #tpu.memory_space<vmem>>, vector<8x72xf32>
    %c0_1 = arith.constant 0 : index
    %c0_2 = arith.constant 0 : index
    %1 = vector.load %arg2[%c0_1, %c0_2] : memref<72x128xf32, #tpu.memory_space<vmem>>, vector<72x128xf32>
    %cst = arith.constant dense<0.000000e+00> : vector<8x128xf32>
    %2 = tpu.matmul %0, %1, %cst {dimension_numbers = #tpu.dot_dimension_numbers<[1], [0], [0], [1], [0, 0, 1, 1], [], []>} : vector<8x72xf32>, vector<72x128xf32>, vector<8x128xf32> -> vector<8x128xf32>
    %c0_3 = arith.constant 0 : index
    %c0_4 = arith.constant 0 : index
    %3 = vector.load %arg3[%c0_3, %c0_4] : memref<1x128xf32, #tpu.memory_space<vmem>>, vector<1x128xf32>
    %4 = vector.broadcast %3 : vector<1x128xf32> to vector<8x128xf32>
    %5 = arith.addf %2, %4 : vector<8x128xf32>
    %c0_5 = arith.constant 0 : index
    %c0_6 = arith.constant 0 : index
    %6 = vector.load %arg4[%c0_5, %c0_6] : memref<8x128xf32, #tpu.memory_space<vmem>>, vector<8x128xf32>
    tpu.vector_store %arg4[%c0_5, %c0_6], %5 {strides = array<i32>} : memref<8x128xf32, #tpu.memory_space<vmem>>, vector<8x128xf32>,
    return
  }
  func.func @transform_0(%arg0: i32) -> (i32, i32) {
    %c0_i32 = arith.constant 0 : i32
    %c0_i32_0 = arith.constant 0 : i32
    return %arg0, %c0_i32 : i32, i32
  }
  func.func @transform_1(%arg0: i32) -> (i32, i32) {
    %c0_i32 = arith.constant 0 : i32
    %c0_i32_0 = arith.constant 0 : i32
    %c0_i32_1 = arith.constant 0 : i32
    return %c0_i32, %c0_i32_0 : i32, i32
  }
  func.func @transform_2(%arg0: i32) -> (i32, i32) {
    %c0_i32 = arith.constant 0 : i32
    %c0_i32_0 = arith.constant 0 : i32
    %c0_i32_1 = arith.constant 0 : i32
    return %c0_i32, %c0_i32_0 : i32, i32
  }
  func.func @transform_3(%arg0: i32) -> (i32, i32) {
    %c0_i32 = arith.constant 0 : i32
    %c0_i32_0 = arith.constant 0 : i32
    return %arg0, %c0_i32 : i32, i32
  }
}

</mosaic_0001>

<bundles_post_ra>
// kernel: _lambda_.3
= control target key start
LH: loop header
LB: loop body
LE: loop exit
PB: predicated region body
PF: predicated region fallthrough
CT: control target
= control target key end

     0   :  { %v263_v0 = vmov 0.0|0.0   ;;  %vm264_vm0 = vmmov 0   ;;  %v265_v4 = vmov 0.0   ;;  %vm61_vm1 = vcmask 1041408   ;;  %s370_s1 = inlined_call_operand.vmem [shape: f32[18,128], index: 1, kind: input, shape index: {}]   ;;  %s371_s0 = inlined_call_operand.vmem [shape: f32[72,18], index: 0, kind: input, shape index: {}]   ;;  %s372_s2 = inlined_call_operand.vmem [shape: f32[1,128], index: 2, kind: input, shape index: {}]   ;;  %s373_s3 = inlined_call_operand.vmem [shape: f32[72,128], index: 3, kind: output, shape index: {}]  }
   0x1   :  { %253 = vmatprep.subr.bf16.mxu0 %v263_v0  ;;  %v23_v1 = vld [vmem:[%s370_s1] sm:$0xff]  ;;  %v24_v2 = vld [vmem:[%s370_s1 + $0x8] sm:$0xff]  ;;  %256 = vmatprep.subr.bf16.mxu1 %v263_v0  ;;  %v25_v5 = vld [vmem:[%s370_s1 + $0x10] sm:$0x3]  ;;  %vm33_vm2 = vcmask 146432  }
   0x2   :  { %v254_v3 = vpack.c.bf16 %v24_v2, %v23_v1  ;;  %226 = vmatprep.mubr.msk.f32.mxu0 %vm264_vm0, %v265_v4  ;;  %241 = vmatprep.mubr.msk.f32.mxu1 %vm264_vm0, %v265_v4  ;;  %v14_v6 = vld [vmem:[%s371_s0] sm:$0xff]  ;;  %v19_v7 = vld [vmem:[%s371_s0 + $0x28] sm:$0xff]  ;;  %v20_v9 = vld [vmem:[%s371_s0 + $0x30] sm:$0xff] }
   0x3   :  { %v15_v8 = vld [vmem:[%s371_s0 + $0x8] sm:$0xff]  ;;  %v16_v10 = vld [vmem:[%s371_s0 + $0x10] sm:$0xff]  ;;  %v21_v11 = vld [vmem:[%s371_s0 + $0x38] sm:$0xff] }
   0x4   :  { %255 = vmatpush3.bf16.msra.mxu0 %v254_v3  ;;  %258 = vmatpush3.bf16.msra.mxu1 %v254_v3  ;;  %v17_v12 = vld [vmem:[%s371_s0 + $0x18] sm:$0xff]  ;;  %v22_v13 = vld [vmem:[%s371_s0 + $0x40] sm:$0xff] }
   0x5   :  { %224 = vmatprep.subr.mxu0 %v265_v4  ;;  %257 = vmatprep.subr.mxu1 %v265_v4  ;;  %v18_v14 = vld [vmem:[%s371_s0 + $0x20] sm:$0xff] }
   0x6   :  { %v197_v15 = vld [vmem:[%s372_s2] ss:$0 sm:$0xff] }
   0x8   :  { %225 = vmatpush3.msk.msra.mxu0 %vm61_vm1, %v25_v5  ;;  %259 = vmatpush3.msk.msra.mxu1 %vm61_vm1, %v25_v5 }
   0x9   :  { %227 = vmatmul.mubr.msk.f32.vlgmr.msra.gmra.mrb[0].mxu0 %vm33_vm2, %v14_v6  ;;  %242 = vmatmul.mubr.msk.f32.vlgmr.msra.gmra.mrb[0].mxu1 %vm33_vm2, %v19_v7 }
   0xa   :  { %229 = vmatprep.mubr.msk.f32.mxu0 %vm264_vm0, %v265_v4  ;;  %244 = vmatprep.mubr.msk.f32.mxu1 %vm264_vm0, %v265_v4 }
   0xd   :  { %230 = vmatmul.mubr.msk.f32.gmra.mrb[2].mxu0 %vm33_vm2, %v15_v8  ;;  %245 = vmatmul.mubr.msk.f32.gmra.mrb[2].mxu1 %vm33_vm2, %v20_v9 }
   0xe   :  { %232 = vmatprep.mubr.msk.f32.mxu0 %vm264_vm0, %v265_v4  ;;  %247 = vmatprep.mubr.msk.f32.mxu1 %vm264_vm0, %v265_v4 }
  0x11   :  { %233 = vmatmul.mubr.msk.f32.gmra.mrb[4].mxu0 %vm33_vm2, %v16_v10  ;;  %248 = vmatmul.mubr.msk.f32.gmra.mrb[4].mxu1 %vm33_vm2, %v21_v11 }
  0x12   :  { %235 = vmatprep.mubr.msk.f32.mxu0 %vm264_vm0, %v265_v4  ;;  %250 = vmatprep.mubr.msk.f32.mxu1 %vm264_vm0, %v265_v4 }
  0x15   :  { %236 = vmatmul.mubr.msk.f32.gmra.mrb[6].mxu0 %vm33_vm2, %v17_v12  ;;  %251 = vmatmul.mubr.msk.f32.gmra.mrb[6].mxu1 %vm33_vm2, %v22_v13 }
  0x16   :  { %238 = vmatprep.mubr.msk.f32.mxu0 %vm264_vm0, %v265_v4 }
  0x19   :  { %239 = vmatmul.mubr.msk.f32.gmra.mrb[8].mxu0 %vm33_vm2, %v18_v14 }
  0xdc   :  { %v131_v16 = vpop.f32.mrb[0].mxu0  ;;  %v156_v17 = vpop.f32.mrb[0].mxu1 }
  0xdd   :  { %v132_v18 = vadd.f32 %v197_v15, %v131_v16  ;;  %v228_v19 = vpop.f32.mrb[1].mxu0  ;;  %v157_v20 = vadd.f32 %v197_v15, %v156_v17  ;;  %v243_v21 = vpop.f32.mrb[1].mxu1 }
  0xdf   :  { %v175_v22 = vmax.f32 %v132_v18, 0.0  ;;  %v180_v23 = vmax.f32 %v157_v20, 0.0 }
  0xe0   :  { %v136_v24 = vpop.f32.mrb[2].mxu0  ;;  %v161_v25 = vpop.f32.mrb[2].mxu1 }
  0xe1   :  { %184 = vst [vmem:[%s373_s3] sm:$0xff] %v175_v22  ;;  %189 = vst [vmem:[%s373_s3 + $0x28] sm:$0xff] %v180_v23  ;;  %v137_v26 = vadd.f32 %v197_v15, %v136_v24  ;;  %v231_v27 = vpop.f32.mrb[3].mxu0  ;;  %v162_v28 = vadd.f32 %v197_v15, %v161_v25  ;;  %v246_v29 = vpop.f32.mrb[3].mxu1 }
  0xe3   :  { %v176_v30 = vmax.f32 %v137_v26, 0.0  ;;  %v181_v31 = vmax.f32 %v162_v28, 0.0 }
  0xe4   :  { %v141_v32 = vpop.f32.mrb[4].mxu0  ;;  %v166_v33 = vpop.f32.mrb[4].mxu1 }
  0xe5   :  { %185 = vst [vmem:[%s373_s3 + $0x8] sm:$0xff] %v176_v30  ;;  %190 = vst [vmem:[%s373_s3 + $0x30] sm:$0xff] %v181_v31  ;;  %v142_v34 = vadd.f32 %v197_v15, %v141_v32  ;;  %v234_v35 = vpop.f32.mrb[5].mxu0  ;;  %v167_v36 = vadd.f32 %v197_v15, %v166_v33  ;;  %v249_v37 = vpop.f32.mrb[5].mxu1 }
  0xe7   :  { %v177_v38 = vmax.f32 %v142_v34, 0.0  ;;  %v182_v39 = vmax.f32 %v167_v36, 0.0 }
  0xe8   :  { %v146_v40 = vpop.f32.mrb[6].mxu0  ;;  %v171_v41 = vpop.f32.mrb[6].mxu1 }
  0xe9   :  { %186 = vst [vmem:[%s373_s3 + $0x10] sm:$0xff] %v177_v38  ;;  %191 = vst [vmem:[%s373_s3 + $0x38] sm:$0xff] %v182_v39  ;;  %v147_v42 = vadd.f32 %v197_v15, %v146_v40  ;;  %v237_v43 = vpop.f32.mrb[7].mxu0  ;;  %v172_v44 = vadd.f32 %v197_v15, %v171_v41  ;;  %v252_v45 = vpop.f32.mrb[7].mxu1 }
  0xeb   :  { %v178_v46 = vmax.f32 %v147_v42, 0.0  ;;  %v183_v47 = vmax.f32 %v172_v44, 0.0 }
  0xec   :  { %v151_v48 = vpop.f32.mrb[8].mxu0 }
  0xed   :  { %187 = vst [vmem:[%s373_s3 + $0x18] sm:$0xff] %v178_v46  ;;  %192 = vst [vmem:[%s373_s3 + $0x40] sm:$0xff] %v183_v47  ;;  %v152_v49 = vadd.f32 %v197_v15, %v151_v48  ;;  %v240_v50 = vpop.f32.mrb[9].mxu0 }
  0xef   :  { %v179_v51 = vmax.f32 %v152_v49, 0.0 }
  0xf1   :  { %188 = vst [vmem:[%s373_s3 + $0x20] sm:$0xff] %v179_v51 }

// kernel: _lambda_.4
= control target key start
LH: loop header
LB: loop body
LE: loop exit
PB: predicated region body
PF: predicated region fallthrough
CT: control target
= control target key end

     0   :  { %vm30_vm0 = vcmask 293888   ;;  %vm43_vm1 = vcmask 1043456   ;;  %s255_s1 = inlined_call_operand.vmem [shape: f32[36,128], index: 1, kind: input, shape index: {}]   ;;  %s256_s0 = inlined_call_operand.vmem [shape: f32[32,36], index: 0, kind: input, shape index: {}]   ;;  %s257_s2 = inlined_call_operand.vmem [shape: f32[1,128], index: 2, kind: input, shape index: {}]   ;;  %s258_s3 = inlined_call_operand.vmem [shape: f32[32,128], index: 3, kind: output, shape index: {}]  }
   0x1   :  { %v18_v0 = vld [vmem:[%s255_s1] sm:$0xff]  ;;  %v19_v1 = vld [vmem:[%s255_s1 + $0x8] sm:$0xff]  ;;  %v20_v2 = vld [vmem:[%s255_s1 + $0x10] sm:$0xff] }
   0x2   :  { %v175_v3 = vpack.c.bf16 %v19_v1, %v18_v0  ;;  %v21_v4 = vld [vmem:[%s255_s1 + $0x18] sm:$0xff]  ;;  %v14_v5 = vld [vmem:[%s256_s0] sm:$0xff]  ;;  %v16_v7 = vld [vmem:[%s256_s0 + $0x10] sm:$0xff] }
   0x3   :  { %v179_v6 = vpack.c.bf16 %v21_v4, %v20_v2  ;;  %169 = vmatprep.mubr.msk.f32.mxu0 %vm30_vm0, %v14_v5  ;;  %v22_v8 = vld [vmem:[%s255_s1 + $0x20] sm:$0xf]  ;;  %172 = vmatprep.mubr.msk.f32.mxu1 %vm30_vm0, %v16_v7  ;;  %v15_v9 = vld [vmem:[%s256_s0 + $0x8] sm:$0xff]  ;;  %v17_v10 = vld [vmem:[%s256_s0 + $0x18] sm:$0xff] }
   0x4   :  { %176 = vmatprep.subr.bf16.mxu0 %v175_v3  ;;  %183 = vmatprep.subr.bf16.mxu1 %v175_v3  ;;  %v144_v11 = vld [vmem:[%s257_s2] ss:$0 sm:$0xff] }
   0x5   :  { %178 = vmatpush3.bf16.msra.mxu0 %v175_v3  ;;  %186 = vmatpush3.bf16.msra.mxu1 %v175_v3 }
   0x6   :  { %180 = vmatprep.subr.bf16.mxu0 %v179_v6  ;;  %184 = vmatprep.subr.bf16.mxu1 %v179_v6 }
   0x9   :  { %182 = vmatpush3.bf16.msra.mxu0 %v179_v6  ;;  %187 = vmatpush3.bf16.msra.mxu1 %v179_v6 }
   0xa   :  { %167 = vmatprep.subr.msk.mxu0 %vm43_vm1, %v22_v8  ;;  %185 = vmatprep.subr.msk.mxu1 %vm43_vm1, %v22_v8 }
   0xd   :  { %168 = vmatpush3.msk.msra.mxu0 %vm43_vm1, %v22_v8  ;;  %188 = vmatpush3.msk.msra.mxu1 %vm43_vm1, %v22_v8 }
   0xe   :  { %170 = vmatmul.mubr.msk.f32.vlgmr.msra.gmra.mrb[0].mxu0 %vm30_vm0, %v15_v9  ;;  %173 = vmatmul.mubr.msk.f32.vlgmr.msra.gmra.mrb[0].mxu1 %vm30_vm0, %v17_v10 }
  0xe1   :  { %v171_v12 = vpop.f32.mrb[0].mxu0  ;;  %v174_v13 = vpop.f32.mrb[0].mxu1 }
  0xe2   :  { %v119_v14 = vadd.f32 %v171_v12, %v144_v11  ;;  %v129_v15 = vadd.f32 %v174_v13, %v144_v11  ;;  %v113_v16 = vpop.f32.mrb[1].mxu0  ;;  %v123_v17 = vpop.f32.mrb[1].mxu1 }
  0xe3   :  { %v114_v18 = vadd.f32 %v144_v11, %v113_v16  ;;  %v124_v19 = vadd.f32 %v144_v11, %v123_v17 }
  0xe4   :  { %v133_v20 = vmax.f32 %v119_v14, 0.0  ;;  %v135_v21 = vmax.f32 %v129_v15, 0.0 }
  0xe5   :  { %v132_v22 = vmax.f32 %v114_v18, 0.0  ;;  %v134_v23 = vmax.f32 %v124_v19, 0.0 }
  0xe6   :  { %137 = vst [vmem:[%s258_s3 + $0x8] sm:$0xff] %v133_v20  ;;  %139 = vst [vmem:[%s258_s3 + $0x18] sm:$0xff] %v135_v21 }
  0xe7   :  { %136 = vst [vmem:[%s258_s3] sm:$0xff] %v132_v22  ;;  %138 = vst [vmem:[%s258_s3 + $0x10] sm:$0xff] %v134_v23 }

// kernel: _lambda_.5
= control target key start
LH: loop header
LB: loop body
LE: loop exit
PB: predicated region body
PF: predicated region fallthrough
CT: control target
= control target key end

     0   :  { %v158_v0 = vmov 0.0|0.0   ;;  %vm159_vm0 = vmmov 0   ;;  %v160_v4 = vmov 0.0   ;;  %vm31_vm1 = vcmask 588800   ;;  %s217_s1 = inlined_call_operand.vmem [shape: f32[72,128], index: 1, kind: input, shape index: {}]   ;;  %s218_s0 = inlined_call_operand.vmem [shape: f32[8,72], index: 0, kind: input, shape index: {}]   ;;  %s219_s2 = inlined_call_operand.vmem [shape: f32[1,128], index: 2, kind: input, shape index: {}]   ;;  %s220_s3 = inlined_call_operand.vmem [shape: f32[8,128], index: 3, kind: output, shape index: {}]  }
   0x1   :  { %143 = vmatprep.subr.bf16.mxu0 %v158_v0  ;;  %v15_v1 = vld [vmem:[%s217_s1] sm:$0xff]  ;;  %v16_v2 = vld [vmem:[%s217_s1 + $0x8] sm:$0xff]  ;;  %v17_v3 = vld [vmem:[%s217_s1 + $0x10] sm:$0xff]  ;;  %140 = vmatprep.mubr.msk.f32.mxu0 %vm159_vm0, %v160_v4 }
   0x2   :  { %v144_v5 = vpack.c.bf16 %v16_v2, %v15_v1  ;;  %v18_v6 = vld [vmem:[%s217_s1 + $0x18] sm:$0xff]  ;;  %v19_v8 = vld [vmem:[%s217_s1 + $0x20] sm:$0xff]  ;;  %v20_v9 = vld [vmem:[%s217_s1 + $0x28] sm:$0xff] }
   0x3   :  { %v147_v7 = vpack.c.bf16 %v18_v6, %v17_v3  ;;  %v150_v10 = vpack.c.bf16 %v20_v9, %v19_v8  ;;  %v21_v11 = vld [vmem:[%s217_s1 + $0x30] sm:$0xff]  ;;  %v22_v12 = vld [vmem:[%s217_s1 + $0x38] sm:$0xff]  ;;  %v23_v14 = vld [vmem:[%s217_s1 + $0x40] sm:$0xff] }
   0x4   :  { %145 = vmatpush3.bf16.msra.mxu0 %v144_v5  ;;  %v153_v13 = vpack.c.bf16 %v22_v12, %v21_v11  ;;  %v14_v15 = vld [vmem:[%s218_s0] sm:$0xff] }
   0x5   :  { %146 = vmatprep.subr.bf16.mxu0 %v158_v0  ;;  %v110_v16 = vld [vmem:[%s219_s2] ss:$0 sm:$0xff] }
   0x8   :  { %148 = vmatpush3.bf16.msra.mxu0 %v147_v7 }
   0x9   :  { %149 = vmatprep.subr.bf16.mxu0 %v158_v0 }
   0xc   :  { %151 = vmatpush3.bf16.msra.mxu0 %v150_v10 }
   0xd   :  { %152 = vmatprep.subr.bf16.mxu0 %v158_v0 }
  0x10   :  { %154 = vmatpush3.bf16.msra.mxu0 %v153_v13 }
  0x11   :  { %138 = vmatprep.subr.mxu0 %v160_v4 }
  0x14   :  { %139 = vmatpush3.msra.mxu0 %v23_v14 }
  0x15   :  { %141 = vmatmul.mubr.msk.f32.vlgmr.msra.gmra.mrb[0].mxu0 %vm31_vm1, %v14_v15 }
  0xe8   :  { %v101_v17 = vpop.f32.mrb[0].mxu0 }
  0xe9   :  { %v102_v18 = vadd.f32 %v110_v16, %v101_v17  ;;  %v142_v19 = vpop.f32.mrb[1].mxu0 }
  0xeb   :  { %105 = vst [vmem:[%s220_s3] sm:$0xff] %v102_v18 }

</bundles_post_ra>
